<compile_context>
chip_gen: v7x
topology: tpu7x:2x2x1
jax: 0.10.0
libtpu: 0.0.40
codegen_flags: <defaults>
</compile_context>

<pallas_src>
import functools

import jax
import jax.numpy as jnp
from jax import lax
from jax.experimental import pallas as pl
from jax.experimental.pallas import tpu as pltpu

# Scoped-VMEM ceiling: 48 MiB leaves headroom on v7x (64 MiB/TC); on v5e/v6e (128 MiB) this and the
# tile caps below (tm -> 512, tn -> 1024) can be raised for mem-bound passes.
VMEM_LIMIT_BYTES = 48 * 1024 * 1024


def _pick_tile(dim, cap, quantum):
    """Largest tile <= cap that divides `dim` and is a multiple of `quantum`, falling back to the
    full dim (always a legal block) when the dim is small / indivisible.  NOTE: the full-dim
    fallback can blow up VMEM for huge indivisible dims -- keep dims divisible by the quantum."""
    if dim <= cap:
        return dim
    t = (cap // quantum) * quantum
    while t >= quantum:
        if dim % t == 0:
            return t
        t -= quantum
    return dim


def _col_tile_cap(d_reduce, itemsize, budget_bytes=12 * 1024 * 1024):
    """Column-tile cap so a double-buffered (d_reduce, tn) weight tile stays within ~budget."""
    cap = budget_bytes // max(1, 2 * d_reduce * itemsize)
    return int(max(128, min(1024, (cap // 128) * 128)))


# ----------------------------- Pallas kernels -----------------------------

def rmsnorm_qkv_kernel(x_ref, g_ref, w_ref, o_ref, xn_sc, *, eps):
    # x_ref: [TM, D] (full D so RMS stats stay fused); g_ref: [1, D]; w_ref: [D, TN]; o_ref: [TM, TN]
    # xn_sc: [TM, D] VMEM scratch holding the normalized rows.
    # Grid = (row tiles, col tiles), col axis innermost + "arbitrary": normalization is computed
    # once per row tile (j == 0) and reused for every output-column tile.
    @pl.when(pl.program_id(1) == 0)
    def _normalize():
        xf = x_ref[...].astype(jnp.float32)
        inv_rms = lax.rsqrt(jnp.mean(xf * xf, axis=-1, keepdims=True) + eps)   # f32 stats (EUP rsqrt)
        xn_sc[...] = (xf * inv_rms * g_ref[...].astype(jnp.float32)).astype(xn_sc.dtype)

    o_ref[...] = jnp.dot(xn_sc[...], w_ref[...],
                         preferred_element_type=jnp.float32).astype(o_ref.dtype)


def rope_k_kernel(k_ref, cos_ref, sin_ref, rmat_ref, o_ref, *, use_roll):
    # One-shot rotate-half RoPE over the (small, G-group) K tensor; blocks (1, 1, tt, hd).
    x = k_ref[0, 0].astype(jnp.float32)
    if use_roll:
        xr = pltpu.roll(x, shift=x.shape[-1] // 2, axis=-1)
    else:
        xr = jnp.dot(x, rmat_ref[...], preferred_element_type=jnp.float32)
    o_ref[0, 0] = (x * cos_ref[...] + xr * sin_ref[...]).astype(o_ref.dtype)


def flash_attn_kernel(q_ref, k_ref, v_ref, cos_ref, sin_ref, rmat_ref,
                      o_ref, q_sc, m_sc, l_sc, acc_sc, *, use_roll):
    # Blocks: q/o: [1, hpg, TT, hd]; k/v: [1, 1, TT, hd] (already roped); cos/sin: [TT, hd];
    # rmat: [hd, hd] constant.  Scratch: q_sc [hpg*TT, hd] (roped Q, input dtype),
    # m/l: [hpg*TT, 1] f32, acc: [hpg*TT, hd] f32.  Grid = (B, G, nq, nk), kv axis innermost.
    hpg = q_ref.shape[1]
    tt = q_ref.shape[2]
    hd = q_ref.shape[3]
    rows = hpg * tt
    qi = pl.program_id(2)
    ki = pl.program_id(3)
    q_start = qi * tt
    k_start = ki * tt

    def rot_half(x):
        if use_roll:
            return pltpu.roll(x, shift=hd // 2, axis=-1)            # XLU slot, MXU stays free
        return jnp.dot(x, rmat_ref[...], preferred_element_type=jnp.float32)

    @pl.when(ki == 0)
    def _init():
        m_sc[...] = jnp.full(m_sc.shape, -1e30, dtype=jnp.float32)
        l_sc[...] = jnp.zeros(l_sc.shape, dtype=jnp.float32)
        acc_sc[...] = jnp.zeros(acc_sc.shape, dtype=jnp.float32)
        # RoPE the query tile ONCE per (b, g, qi); reused across every kv step.
        cos = cos_ref[...]
        sin = sin_ref[...]
        for hh in range(hpg):                                        # static unroll, small
            qh = q_ref[0, hh].astype(jnp.float32)                    # [TT, hd]
            q_sc[pl.ds(hh * tt, tt), :] = (qh * cos + rot_half(qh) * sin).astype(q_sc.dtype)

    def scores():
        # contract head_dim of both operands (no transposed copy); native-dtype MXU operands.
        return lax.dot_general(q_sc[...], k_ref[0, 0], (((1,), (1,)), ((), ())),
                               preferred_element_type=jnp.float32)    # [rows, TT]

    def online_softmax_update(s):
        v = v_ref[0, 0]
        m_prev = m_sc[...]
        m_new = jnp.maximum(m_prev, jnp.max(s, axis=-1, keepdims=True))
        alpha = jnp.exp(m_prev - m_new)
        p = jnp.exp(s - m_new)
        l_sc[...] = alpha * l_sc[...] + jnp.sum(p, axis=-1, keepdims=True)
        acc_sc[...] = alpha * acc_sc[...] + jnp.dot(
            p.astype(v.dtype), v, preferred_element_type=jnp.float32)
        m_sc[...] = m_new

    # Block classification: fully below diagonal (no mask needed), straddling the diagonal
    # (mask needed), or fully above (skipped -- and its K/V DMA is skipped via clamped index maps).
    below_diag = k_start + tt - 1 <= q_start
    needed = k_start <= q_start + tt - 1

    @pl.when(below_diag)
    def _full_block():
        online_softmax_update(scores())

    @pl.when(jnp.logical_and(needed, jnp.logical_not(below_diag)))
    def _diag_block():
        s = scores()
        row = q_start + lax.broadcasted_iota(jnp.int32, (hpg, tt, tt), 1).reshape(rows, tt)
        col = k_start + lax.broadcasted_iota(jnp.int32, (rows, tt), 1)
        online_softmax_update(jnp.where(col <= row, s, -1e30))

    @pl.when(ki == pl.num_programs(3) - 1)
    def _finalize():
        inv_l = pl.reciprocal(l_sc[...], approx=True)    # EUP slot; normalize after PV, not P
        o_ref[0] = (acc_sc[...] * inv_l).reshape(hpg, tt, hd).astype(o_ref.dtype)


def out_proj_residual_kernel(a_ref, w_ref, x_ref, o_ref):
    # a_ref: [TM, D] attention out; w_ref: [D, TN]; x_ref: [TM, TN] residual; o_ref: [TM, TN]
    proj = jnp.dot(a_ref[...], w_ref[...], preferred_element_type=jnp.float32)
    o_ref[...] = (x_ref[...].astype(jnp.float32) + proj).astype(o_ref.dtype)


# ----------------------------- wrapper -----------------------------

def prepare_params(params, *, num_heads, query_groups):
    """One-time weight prep for the kernels:
    - RMSNorm weight reshaped to [1, D];
    - q/k columns of W_qkv permuted per head from interleaved-pair order to half-split order so the
      module's interleaved RoPE == rotate-half RoPE inside the kernels (dot products are invariant
      to a common permutation of q/k head dims, v is untouched -> outputs are unchanged);
    - softmax scale 1/sqrt(hd) folded into the q columns (rope is linear, so pre-scaling commutes).
    """
    w = params["w_qkv"]
    D = w.shape[0]
    hd = D // num_heads
    d_q = num_heads * hd
    d_kv = query_groups * hd
    perm = jnp.concatenate([jnp.arange(0, hd, 2), jnp.arange(1, hd, 2)])
    scale = 1.0 / (hd ** 0.5)
    wq = (w[:, :d_q].reshape(D, num_heads, hd)[:, :, perm] * scale).reshape(D, d_q)
    wk = w[:, d_q:d_q + d_kv].reshape(D, query_groups, hd)[:, :, perm].reshape(D, d_kv)
    wv = w[:, d_q + d_kv:]
    return {
        "rms_weight": params["rms_weight"].reshape(1, D),
        "w_qkv": jnp.concatenate([wq, wk, wv], axis=1).astype(w.dtype),
        "w_o": params["w_o"],
    }


def attention_block_forward(x, params, *, num_heads, query_groups, theta, eps):
    """AttentionBlock forward (eval mode, causal=True, no padding mask / kv-cache)."""
    B, T, D = x.shape
    hd = D // num_heads
    d_q = num_heads * hd
    d_kv = query_groups * hd
    Dqkv = d_q + 2 * d_kv
    BT = B * T
    hpg = num_heads // query_groups
    dtype = x.dtype
    itemsize = dtype.itemsize
    row_q = 16 if dtype == jnp.bfloat16 else 8       # bf16 sublane packing
    use_roll = (hd % 128 == 0)                       # roll-based rotate-half on lane-aligned hd

    x_flat = x.reshape(BT, D)

    # --- 1) fused RMSNorm + QKV projection (tiled; normalized rows cached in VMEM scratch) ---
    tm = _pick_tile(BT, 256, row_q)
    tn = _pick_tile(Dqkv, _col_tile_cap(D, itemsize), 128)
    qkv = pl.pallas_call(
        functools.partial(rmsnorm_qkv_kernel, eps=eps),
        out_shape=jax.ShapeDtypeStruct((BT, Dqkv), dtype),
        grid=(BT // tm, Dqkv // tn),
        in_specs=[
            pl.BlockSpec((tm, D), lambda i, j: (i, 0)),
            pl.BlockSpec((1, D), lambda i, j: (0, 0)),
            pl.BlockSpec((D, tn), lambda i, j: (0, j)),
        ],
        out_specs=pl.BlockSpec((tm, tn), lambda i, j: (i, j)),
        scratch_shapes=[pltpu.VMEM((tm, D), dtype)],
        compiler_params=pltpu.CompilerParams(
            dimension_semantics=("parallel", "arbitrary"),
            vmem_limit_bytes=VMEM_LIMIT_BYTES),
    )(x_flat, params["rms_weight"], params["w_qkv"])

    # --- split heads (XLA glue; attention tiles want (time, head_dim) minor dims) ---
    qkv = qkv.reshape(B, T, Dqkv)
    q = qkv[..., :d_q].reshape(B, T, num_heads, hd)
    k = qkv[..., d_q:d_q + d_kv].reshape(B, T, query_groups, hd)
    v = qkv[..., d_q + d_kv:].reshape(B, T, query_groups, hd)
    qh = jnp.transpose(q, (0, 2, 1, 3))   # [B, H, T, hd]
    kh = jnp.transpose(k, (0, 2, 1, 3))   # [B, G, T, hd]  (kept at G groups: no jnp.repeat)
    vh = jnp.transpose(v, (0, 2, 1, 3))

    # rotate-half RoPE tables (single cos/sin pair; sin carries the half-swap sign) + constant rmat.
    inv_freq = 1.0 / (theta ** (jnp.arange(0, hd, 2, dtype=jnp.float32) / hd))
    pos = jnp.arange(T, dtype=jnp.float32)
    f = jnp.outer(pos, inv_freq)                                        # [T, hd/2]
    cos_tab = jnp.concatenate([jnp.cos(f), jnp.cos(f)], axis=-1)        # [T, hd]
    sin_tab = jnp.concatenate([-jnp.sin(f), jnp.sin(f)], axis=-1)       # signed: rope = x*cos + rot(x)*sin
    idx = jnp.arange(hd)
    rmat = (idx[:, None] == ((idx[None, :] + hd // 2) % hd)).astype(jnp.float32)  # x @ rmat = [x2, x1]

    tt = _pick_tile(T, 256, row_q)
    nq = T // tt
    nk = nq

    # --- 2a) K RoPE pre-pass (once over the small [B, G, T, hd] tensor, out of the hot loop) ---
    kh = pl.pallas_call(
        functools.partial(rope_k_kernel, use_roll=use_roll),
        out_shape=jax.ShapeDtypeStruct((B, query_groups, T, hd), dtype),
        grid=(B, query_groups, nq),
        in_specs=[
            pl.BlockSpec((1, 1, tt, hd), lambda b, g, t: (b, g, t, 0)),
            pl.BlockSpec((tt, hd), lambda b, g, t: (t, 0)),
            pl.BlockSpec((tt, hd), lambda b, g, t: (t, 0)),
            pl.BlockSpec((hd, hd), lambda b, g, t: (0, 0)),
        ],
        out_specs=pl.BlockSpec((1, 1, tt, hd), lambda b, g, t: (b, g, t, 0)),
        compiler_params=pltpu.CompilerParams(
            dimension_semantics=("parallel", "parallel", "parallel"),
            vmem_limit_bytes=VMEM_LIMIT_BYTES),
    )(kh, cos_tab, sin_tab, rmat)

    # --- 2b) flash-style causal attention; all hpg heads of a GQA group per grid step ---
    attn = pl.pallas_call(
        functools.partial(flash_attn_kernel, use_roll=use_roll),
        out_shape=jax.ShapeDtypeStruct((B, num_heads, T, hd), dtype),
        grid=(B, query_groups, nq, nk),
        in_specs=[
            pl.BlockSpec((1, hpg, tt, hd), lambda b, g, qi, ki: (b, g, qi, 0)),
            # K/V index clamped to the causal range: skipped (upper-triangular) steps re-use the
            # previous block index, so Pallas does not issue their DMAs.
            pl.BlockSpec((1, 1, tt, hd), lambda b, g, qi, ki: (b, g, jnp.minimum(ki, qi), 0)),
            pl.BlockSpec((1, 1, tt, hd), lambda b, g, qi, ki: (b, g, jnp.minimum(ki, qi), 0)),
            pl.BlockSpec((tt, hd), lambda b, g, qi, ki: (qi, 0)),
            pl.BlockSpec((tt, hd), lambda b, g, qi, ki: (qi, 0)),
            pl.BlockSpec((hd, hd), lambda b, g, qi, ki: (0, 0)),
        ],
        out_specs=pl.BlockSpec((1, hpg, tt, hd), lambda b, g, qi, ki: (b, g, qi, 0)),
        scratch_shapes=[
            pltpu.VMEM((hpg * tt, hd), dtype),        # roped Q (reused across kv steps)
            pltpu.VMEM((hpg * tt, 1), jnp.float32),   # running max
            pltpu.VMEM((hpg * tt, 1), jnp.float32),   # running denom
            pltpu.VMEM((hpg * tt, hd), jnp.float32),  # output accumulator
        ],
        compiler_params=pltpu.CompilerParams(
            dimension_semantics=("parallel", "parallel", "parallel", "arbitrary"),
            vmem_limit_bytes=VMEM_LIMIT_BYTES),
    )(qh, kh, vh, cos_tab, sin_tab, rmat)

    a_flat = jnp.transpose(attn, (0, 2, 1, 3)).reshape(BT, D)

    # --- 3) output projection + residual (tiled; dropout is identity in eval mode) ---
    tn2 = _pick_tile(D, _col_tile_cap(D, itemsize), 128)
    y = pl.pallas_call(
        out_proj_residual_kernel,
        out_shape=jax.ShapeDtypeStruct((BT, D), dtype),
        grid=(BT // tm, D // tn2),
        in_specs=[
            pl.BlockSpec((tm, D), lambda i, j: (i, 0)),
            pl.BlockSpec((D, tn2), lambda i, j: (0, j)),
            pl.BlockSpec((tm, tn2), lambda i, j: (i, j)),
        ],
        out_specs=pl.BlockSpec((tm, tn2), lambda i, j: (i, j)),
        compiler_params=pltpu.CompilerParams(
            dimension_semantics=("parallel", "parallel"),
            vmem_limit_bytes=VMEM_LIMIT_BYTES),
    )(a_flat, params["w_o"], x_flat)

    # cache_out corresponds to use_cache=False -> None
    return y.reshape(B, T, D), None


# ----------------------------- pure-JAX reference (mirrors the PyTorch module) ------------------

def reference_forward(x, params, *, num_heads, query_groups, theta, eps):
    B, T, D = x.shape
    hd = D // num_heads
    d_q = num_heads * hd
    d_kv = query_groups * hd
    xf = x.astype(jnp.float32)
    rms = jnp.sqrt(jnp.mean(xf * xf, axis=-1, keepdims=True) + eps)
    xn = params["rms_weight"] * (xf / rms)
    qkv = xn @ params["w_qkv"]
    q = qkv[..., :d_q].reshape(B, T, num_heads, hd)
    k = qkv[..., d_q:d_q + d_kv].reshape(B, T, query_groups, hd)
    v = qkv[..., d_q + d_kv:].reshape(B, T, query_groups, hd)

    inv_freq = 1.0 / (theta ** (jnp.arange(0, hd, 2, dtype=jnp.float32) / hd))
    pos = jnp.arange(T, dtype=jnp.float32)
    f = jnp.outer(pos, inv_freq)
    cos = jnp.cos(f)[None, :, None, :]
    sin = jnp.sin(f)[None, :, None, :]

    def rope_interleaved(u):
        u1 = u[..., 0::2]
        u2 = u[..., 1::2]
        r1 = u1 * cos - u2 * sin
        r2 = u1 * sin + u2 * cos
        return jnp.stack([r1, r2], axis=-1).reshape(u.shape)

    q = rope_interleaved(q)
    k = rope_interleaved(k)

    hpg = num_heads // query_groups
    if hpg > 1:
        k = jnp.repeat(k, hpg, axis=2)
        v = jnp.repeat(v, hpg, axis=2)

    qh = q.transpose(0, 2, 1, 3)
    kh = k.transpose(0, 2, 1, 3)
    vh = v.transpose(0, 2, 1, 3)
    s = jnp.einsum("bhqd,bhkd->bhqk", qh, kh) / jnp.sqrt(jnp.float32(hd))
    causal = jnp.tril(jnp.ones((T, T), dtype=bool))
    s = jnp.where(causal[None, None], s, -jnp.inf)
    p = jax.nn.softmax(s, axis=-1)
    o = jnp.einsum("bhqk,bhkd->bhqd", p, vh)
    o = o.transpose(0, 2, 1, 3).reshape(B, T, D)
    return (x + o @ params["w_o"]).astype(x.dtype)


# ----------------------------- main -----------------------------

if __name__ == "__main__":
    B, T, d_model = 2, 8, 32
    num_heads, query_groups = 4, 2
    theta, eps = 10000.0, 1e-7
    head_dim = d_model // num_heads
    d_qkv = num_heads * head_dim + 2 * query_groups * head_dim

    key = jax.random.PRNGKey(0)
    kx, kq, ko = jax.random.split(key, 3)
    x = jax.random.normal(kx, (B, T, d_model), dtype=jnp.float32)
    params = {
        # RMSNorm weight initialized to ones (as in the module)
        "rms_weight": jnp.ones((d_model,), dtype=jnp.float32),
        # Linear weights stored [in, out] (PyTorch stores [out, in]; y = x @ W^T)
        "w_qkv": jax.random.normal(kq, (d_model, d_qkv), dtype=jnp.float32) * (d_model ** -0.5),
        "w_o": jax.random.normal(ko, (d_model, d_model), dtype=jnp.float32) * (d_model ** -0.5),
    }

    # One-time kernel-side weight prep (RoPE interleave -> rotate-half permutation + scale fold).
    kparams = prepare_params(params, num_heads=num_heads, query_groups=query_groups)

    fwd = jax.jit(functools.partial(
        attention_block_forward,
        num_heads=num_heads, query_groups=query_groups, theta=theta, eps=eps))

    y, cache = fwd(x, kparams)
    y = jax.block_until_ready(y)
    assert y.shape == (B, T, d_model)
    assert cache is None
    assert bool(jnp.all(jnp.isfinite(y)))

    y_ref = reference_forward(x, params, num_heads=num_heads,
                              query_groups=query_groups, theta=theta, eps=eps)
    err = float(jnp.max(jnp.abs(y - y_ref)))
    assert err < 2e-2, f"mismatch vs reference: max abs err = {err}"

    print("KERNEL_OK")
</pallas_src>

<mosaic_0001>
module attributes {stable_mosaic.version = 11 : i64} {
  func.func @rmsnorm_qkv_kernel(%arg0: i32, %arg1: i32, %arg2: memref<16x32xf32, #tpu.memory_space<vmem>>, %arg3: memref<1x32xf32, #tpu.memory_space<vmem>>, %arg4: memref<32x64xf32, #tpu.memory_space<vmem>>, %arg5: memref<16x64xf32, #tpu.memory_space<vmem>>, %arg6: memref<16x32xf32, #tpu.memory_space<vmem>>) attributes {dimension_semantics = [#tpu.dimension_semantics<parallel>, #tpu.dimension_semantics<arbitrary>], iteration_bounds = array<i64: 1, 1>, scalar_prefetch = 0 : i64, scratch_operands = 1 : i64, tpu.core_type = #tpu.core_type<tc>, window_params = [{transform_indices = @transform_0, window_bounds = array<i64: 16, 32>}, {pipeline_mode = #tpu.pipeline_mode<synchronous>, transform_indices = @transform_1, window_bounds = array<i64: 1, 32>}, {transform_indices = @transform_2, window_bounds = array<i64: 32, 64>}, {transform_indices = @transform_3, window_bounds = array<i64: 16, 64>}]} {
    %c0_i32 = arith.constant 0 : i32
    %0 = arith.cmpi eq, %arg1, %c0_i32 : i32
    %1 = arith.extui %0 : i1 to i32
    %c0_i32_0 = arith.constant 0 : i32
    %2 = arith.cmpi ne, %1, %c0_i32_0 : i32
    scf.if %2 {
      %c0_6 = arith.constant 0 : index
      %c0_7 = arith.constant 0 : index
      %7 = vector.load %arg2[%c0_6, %c0_7] : memref<16x32xf32, #tpu.memory_space<vmem>>, vector<16x32xf32>
      %8 = arith.mulf %7, %7 : vector<16x32xf32>
      %cst_8 = arith.constant dense<0.000000e+00> : vector<16xf32>
      %9 = vector.multi_reduction <add>, %8, %cst_8 [1] : vector<16x32xf32> to vector<16xf32>
      %10 = vector.shape_cast %9 : vector<16xf32> to vector<16x1xf32>
      %cst_9 = arith.constant 3.200000e+01 : f32
      %11 = vector.broadcast %cst_9 : f32 to vector<16x1xf32>
      %12 = arith.divf %10, %11 : vector<16x1xf32>
      %cst_10 = arith.constant 1.000000e-07 : f32
      %13 = vector.broadcast %cst_10 : f32 to vector<16x1xf32>
      %14 = arith.addf %12, %13 : vector<16x1xf32>
      %15 = math.rsqrt %14 : vector<16x1xf32>
      %16 = vector.broadcast %15 : vector<16x1xf32> to vector<16x32xf32>
      %17 = arith.mulf %7, %16 : vector<16x32xf32>
      %c0_11 = arith.constant 0 : index
      %c0_12 = arith.constant 0 : index
      %18 = vector.load %arg3[%c0_11, %c0_12] : memref<1x32xf32, #tpu.memory_space<vmem>>, vector<1x32xf32>
      %19 = vector.broadcast %18 : vector<1x32xf32> to vector<16x32xf32>
      %20 = arith.mulf %17, %19 : vector<16x32xf32>
      %c0_13 = arith.constant 0 : index
      %c0_14 = arith.constant 0 : index
      %21 = vector.load %arg6[%c0_13, %c0_14] : memref<16x32xf32, #tpu.memory_space<vmem>>, vector<16x32xf32>
      tpu.vector_store %arg6[%c0_13, %c0_14], %20 {strides = array<i32>} : memref<16x32xf32, #tpu.memory_space<vmem>>, vector<16x32xf32>,
    } else {
    }
    %c0 = arith.constant 0 : index
    %c0_1 = arith.constant 0 : index
    %3 = vector.load %arg6[%c0, %c0_1] : memref<16x32xf32, #tpu.memory_space<vmem>>, vector<16x32xf32>
    %c0_2 = arith.constant 0 : index
    %c0_3 = arith.constant 0 : index
    %4 = vector.load %arg4[%c0_2, %c0_3] : memref<32x64xf32, #tpu.memory_space<vmem>>, vector<32x64xf32>
    %cst = arith.constant dense<0.000000e+00> : vector<16x64xf32>
    %5 = tpu.matmul %3, %4, %cst {dimension_numbers = #tpu.dot_dimension_numbers<[1], [0], [0], [1], [0, 0, 1, 1], [], []>} : vector<16x32xf32>, vector<32x64xf32>, vector<16x64xf32> -> vector<16x64xf32>
    %c0_4 = arith.constant 0 : index
    %c0_5 = arith.constant 0 : index
    %6 = vector.load %arg5[%c0_4, %c0_5] : memref<16x64xf32, #tpu.memory_space<vmem>>, vector<16x64xf32>
    tpu.vector_store %arg5[%c0_4, %c0_5], %5 {strides = array<i32>} : memref<16x64xf32, #tpu.memory_space<vmem>>, vector<16x64xf32>,
    return
  }
  func.func @transform_0(%arg0: i32, %arg1: i32) -> (i32, i32) {
    %c0_i32 = arith.constant 0 : i32
    %c0_i32_0 = arith.constant 0 : i32
    return %arg0, %c0_i32 : i32, i32
  }
  func.func @transform_1(%arg0: i32, %arg1: i32) -> (i32, i32) {
    %c0_i32 = arith.constant 0 : i32
    %c0_i32_0 = arith.constant 0 : i32
    %c0_i32_1 = arith.constant 0 : i32
    return %c0_i32, %c0_i32_0 : i32, i32
  }
  func.func @transform_2(%arg0: i32, %arg1: i32) -> (i32, i32) {
    %c0_i32 = arith.constant 0 : i32
    %c0_i32_0 = arith.constant 0 : i32
    return %c0_i32, %arg1 : i32, i32
  }
  func.func @transform_3(%arg0: i32, %arg1: i32) -> (i32, i32) {
    %c0_i32 = arith.constant 0 : i32
    return %arg0, %arg1 : i32, i32
  }
}

module attributes {stable_mosaic.version = 11 : i64} {
  func.func @rope_k_kernel(%arg0: i32, %arg1: i32, %arg2: i32, %arg3: memref<1x1x8x8xf32, #tpu.memory_space<vmem>>, %arg4: memref<8x8xf32, #tpu.memory_space<vmem>>, %arg5: memref<8x8xf32, #tpu.memory_space<vmem>>, %arg6: memref<8x8xf32, #tpu.memory_space<vmem>>, %arg7: memref<1x1x8x8xf32, #tpu.memory_space<vmem>>) attributes {dimension_semantics = [#tpu.dimension_semantics<parallel>, #tpu.dimension_semantics<parallel>, #tpu.dimension_semantics<parallel>], iteration_bounds = array<i64: 2, 2, 1>, scalar_prefetch = 0 : i64, scratch_operands = 0 : i64, tpu.core_type = #tpu.core_type<tc>, window_params = [{transform_indices = @transform_0, window_bounds = array<i64: 1, 1, 8, 8>}, {transform_indices = @transform_1, window_bounds = array<i64: 8, 8>}, {transform_indices = @transform_2, window_bounds = array<i64: 8, 8>}, {pipeline_mode = #tpu.pipeline_mode<synchronous>, transform_indices = @transform_3, window_bounds = array<i64: 8, 8>}, {transform_indices = @transform_4, window_bounds = array<i64: 1, 1, 8, 8>}]} {
    %c0 = arith.constant 0 : index
    %c0_0 = arith.constant 0 : index
    %c0_1 = arith.constant 0 : index
    %c0_2 = arith.constant 0 : index
    %0 = vector.load %arg3[%c0, %c0_0, %c0_1, %c0_2] : memref<1x1x8x8xf32, #tpu.memory_space<vmem>>, vector<1x1x8x8xf32>
    %1 = vector.shape_cast %0 : vector<1x1x8x8xf32> to vector<8x8xf32>
    %c0_3 = arith.constant 0 : index
    %c0_4 = arith.constant 0 : index
    %2 = vector.load %arg6[%c0_3, %c0_4] : memref<8x8xf32, #tpu.memory_space<vmem>>, vector<8x8xf32>
    %cst = arith.constant dense<0.000000e+00> : vector<8x8xf32>
    %3 = tpu.matmul %1, %2, %cst {dimension_numbers = #tpu.dot_dimension_numbers<[1], [0], [0], [1], [0, 0, 1, 1], [], []>} : vector<8x8xf32>, vector<8x8xf32>, vector<8x8xf32> -> vector<8x8xf32>
    %c0_5 = arith.constant 0 : index
    %c0_6 = arith.constant 0 : index
    %4 = vector.load %arg4[%c0_5, %c0_6] : memref<8x8xf32, #tpu.memory_space<vmem>>, vector<8x8xf32>
    %5 = arith.mulf %1, %4 : vector<8x8xf32>
    %c0_7 = arith.constant 0 : index
    %c0_8 = arith.constant 0 : index
    %6 = vector.load %arg5[%c0_7, %c0_8] : memref<8x8xf32, #tpu.memory_space<vmem>>, vector<8x8xf32>
    %7 = arith.mulf %3, %6 : vector<8x8xf32>
    %8 = arith.addf %5, %7 : vector<8x8xf32>
    %c0_9 = arith.constant 0 : index
    %c0_10 = arith.constant 0 : index
    %c0_11 = arith.constant 0 : index
    %c0_12 = arith.constant 0 : index
    %9 = vector.load %arg7[%c0_9, %c0_10, %c0_11, %c0_12] : memref<1x1x8x8xf32, #tpu.memory_space<vmem>>, vector<1x1x8x8xf32>
    %10 = vector.shape_cast %9 : vector<1x1x8x8xf32> to vector<8x8xf32>
    %11 = vector.shape_cast %8 : vector<8x8xf32> to vector<1x1x8x8xf32>
    tpu.vector_store %arg7[%c0_9, %c0_10, %c0_11, %c0_12], %11 {strides = array<i32>} : memref<1x1x8x8xf32, #tpu.memory_space<vmem>>, vector<1x1x8x8xf32>,
    return
  }
  func.func @transform_0(%arg0: i32, %arg1: i32, %arg2: i32) -> (i32, i32, i32, i32) {
    %c0_i32 = arith.constant 0 : i32
    %c0_i32_0 = arith.constant 0 : i32
    return %arg0, %arg1, %arg2, %c0_i32 : i32, i32, i32, i32
  }
  func.func @transform_1(%arg0: i32, %arg1: i32, %arg2: i32) -> (i32, i32) {
    %c0_i32 = arith.constant 0 : i32
    %c0_i32_0 = arith.constant 0 : i32
    return %arg2, %c0_i32 : i32, i32
  }
  func.func @transform_2(%arg0: i32, %arg1: i32, %arg2: i32) -> (i32, i32) {
    %c0_i32 = arith.constant 0 : i32
    %c0_i32_0 = arith.constant 0 : i32
    return %arg2, %c0_i32 : i32, i32
  }
  func.func @transform_3(%arg0: i32, %arg1: i32, %arg2: i32) -> (i32, i32) {
    %c0_i32 = arith.constant 0 : i32
    %c0_i32_0 = arith.constant 0 : i32
    %c0_i32_1 = arith.constant 0 : i32
    return %c0_i32, %c0_i32_0 : i32, i32
  }
  func.func @transform_4(%arg0: i32, %arg1: i32, %arg2: i32) -> (i32, i32, i32, i32) {
    %c0_i32 = arith.constant 0 : i32
    %c0_i32_0 = arith.constant 0 : i32
    return %arg0, %arg1, %arg2, %c0_i32 : i32, i32, i32, i32
  }
}

module attributes {stable_mosaic.version = 11 : i64} {
  func.func @flash_attn_kernel(%arg0: i32, %arg1: i32, %arg2: i32, %arg3: i32, %arg4: memref<1x2x8x8xf32, #tpu.memory_space<vmem>>, %arg5: memref<1x1x8x8xf32, #tpu.memory_space<vmem>>, %arg6: memref<1x1x8x8xf32, #tpu.memory_space<vmem>>, %arg7: memref<8x8xf32, #tpu.memory_space<vmem>>, %arg8: memref<8x8xf32, #tpu.memory_space<vmem>>, %arg9: memref<8x8xf32, #tpu.memory_space<vmem>>, %arg10: memref<1x2x8x8xf32, #tpu.memory_space<vmem>>, %arg11: memref<16x8xf32, #tpu.memory_space<vmem>>, %arg12: memref<16x1xf32, #tpu.memory_space<vmem>>, %arg13: memref<16x1xf32, #tpu.memory_space<vmem>>, %arg14: memref<16x8xf32, #tpu.memory_space<vmem>>) attributes {dimension_semantics = [#tpu.dimension_semantics<parallel>, #tpu.dimension_semantics<parallel>, #tpu.dimension_semantics<parallel>, #tpu.dimension_semantics<arbitrary>], iteration_bounds = array<i64: 2, 2, 1, 1>, scalar_prefetch = 0 : i64, scratch_operands = 4 : i64, tpu.core_type = #tpu.core_type<tc>, window_params = [{transform_indices = @transform_0, window_bounds = array<i64: 1, 2, 8, 8>}, {transform_indices = @transform_1, window_bounds = array<i64: 1, 1, 8, 8>}, {transform_indices = @transform_2, window_bounds = array<i64: 1, 1, 8, 8>}, {transform_indices = @transform_3, window_bounds = array<i64: 8, 8>}, {transform_indices = @transform_4, window_bounds = array<i64: 8, 8>}, {pipeline_mode = #tpu.pipeline_mode<synchronous>, transform_indices = @transform_5, window_bounds = array<i64: 8, 8>}, {transform_indices = @transform_6, window_bounds = array<i64: 1, 2, 8, 8>}]} {
    %c8_i32 = arith.constant 8 : i32
    %0 = arith.muli %arg2, %c8_i32 : i32
    %c8_i32_0 = arith.constant 8 : i32
    %1 = arith.muli %arg3, %c8_i32_0 : i32
    %c0_i32 = arith.constant 0 : i32
    %2 = arith.cmpi eq, %arg3, %c0_i32 : i32
    %3 = arith.extui %2 : i1 to i32
    %c0_i32_1 = arith.constant 0 : i32
    %4 = arith.cmpi ne, %3, %c0_i32_1 : i32
    scf.if %4 {
      %cst = arith.constant -1.000000e+30 : f32
      %20 = vector.broadcast %cst : f32 to vector<16x1xf32>
      %c0 = arith.constant 0 : index
      %c0_9 = arith.constant 0 : index
      %21 = vector.load %arg12[%c0, %c0_9] : memref<16x1xf32, #tpu.memory_space<vmem>>, vector<16x1xf32>
      tpu.vector_store %arg12[%c0, %c0_9], %20 {strides = array<i32>} : memref<16x1xf32, #tpu.memory_space<vmem>>, vector<16x1xf32>,
      %cst_10 = arith.constant 0.000000e+00 : f32
      %22 = vector.broadcast %cst_10 : f32 to vector<16x1xf32>
      %c0_11 = arith.constant 0 : index
      %c0_12 = arith.constant 0 : index
      %23 = vector.load %arg13[%c0_11, %c0_12] : memref<16x1xf32, #tpu.memory_space<vmem>>, vector<16x1xf32>
      tpu.vector_store %arg13[%c0_11, %c0_12], %22 {strides = array<i32>} : memref<16x1xf32, #tpu.memory_space<vmem>>, vector<16x1xf32>,
      %cst_13 = arith.constant 0.000000e+00 : f32
      %24 = vector.broadcast %cst_13 : f32 to vector<16x8xf32>
      %c0_14 = arith.constant 0 : index
      %c0_15 = arith.constant 0 : index
      %25 = vector.load %arg14[%c0_14, %c0_15] : memref<16x8xf32, #tpu.memory_space<vmem>>, vector<16x8xf32>
      tpu.vector_store %arg14[%c0_14, %c0_15], %24 {strides = array<i32>} : memref<16x8xf32, #tpu.memory_space<vmem>>, vector<16x8xf32>,
      %c0_16 = arith.constant 0 : index
      %c0_17 = arith.constant 0 : index
      %26 = vector.load %arg7[%c0_16, %c0_17] : memref<8x8xf32, #tpu.memory_space<vmem>>, vector<8x8xf32>
      %c0_18 = arith.constant 0 : index
      %c0_19 = arith.constant 0 : index
      %27 = vector.load %arg8[%c0_18, %c0_19] : memref<8x8xf32, #tpu.memory_space<vmem>>, vector<8x8xf32>
      %c0_20 = arith.constant 0 : index
      %c0_21 = arith.constant 0 : index
      %c0_22 = arith.constant 0 : index
      %c0_23 = arith.constant 0 : index
      %28 = vector.load %arg4[%c0_20, %c0_21, %c0_22, %c0_23] : memref<1x2x8x8xf32, #tpu.memory_space<vmem>>, vector<1x1x8x8xf32>
      %29 = vector.shape_cast %28 : vector<1x1x8x8xf32> to vector<8x8xf32>
      %30 = arith.mulf %29, %26 : vector<8x8xf32>
      %c0_24 = arith.constant 0 : index
      %c0_25 = arith.constant 0 : index
      %31 = vector.load %arg9[%c0_24, %c0_25] : memref<8x8xf32, #tpu.memory_space<vmem>>, vector<8x8xf32>
      %cst_26 = arith.constant dense<0.000000e+00> : vector<8x8xf32>
      %32 = tpu.matmul %29, %31, %cst_26 {dimension_numbers = #tpu.dot_dimension_numbers<[1], [0], [0], [1], [0, 0, 1, 1], [], []>} : vector<8x8xf32>, vector<8x8xf32>, vector<8x8xf32> -> vector<8x8xf32>
      %33 = arith.mulf %32, %27 : vector<8x8xf32>
      %34 = arith.addf %30, %33 : vector<8x8xf32>
      %c0_27 = arith.constant 0 : index
      %c0_28 = arith.constant 0 : index
      %35 = vector.load %arg11[%c0_27, %c0_28] : memref<16x8xf32, #tpu.memory_space<vmem>>, vector<8x8xf32>
      tpu.vector_store %arg11[%c0_27, %c0_28], %34 {strides = array<i32>} : memref<16x8xf32, #tpu.memory_space<vmem>>, vector<8x8xf32>,
      %c0_29 = arith.constant 0 : index
      %c1 = arith.constant 1 : index
      %c0_30 = arith.constant 0 : index
      %c0_31 = arith.constant 0 : index
      %36 = vector.load %arg4[%c0_29, %c1, %c0_30, %c0_31] : memref<1x2x8x8xf32, #tpu.memory_space<vmem>>, vector<1x1x8x8xf32>
      %37 = vector.shape_cast %36 : vector<1x1x8x8xf32> to vector<8x8xf32>
      %38 = arith.mulf %37, %26 : vector<8x8xf32>
      %c0_32 = arith.constant 0 : index
      %c0_33 = arith.constant 0 : index
      %39 = vector.load %arg9[%c0_32, %c0_33] : memref<8x8xf32, #tpu.memory_space<vmem>>, vector<8x8xf32>
      %cst_34 = arith.constant dense<0.000000e+00> : vector<8x8xf32>
      %40 = tpu.matmul %37, %39, %cst_34 {dimension_numbers = #tpu.dot_dimension_numbers<[1], [0], [0], [1], [0, 0, 1, 1], [], []>} : vector<8x8xf32>, vector<8x8xf32>, vector<8x8xf32> -> vector<8x8xf32>
      %41 = arith.mulf %40, %27 : vector<8x8xf32>
      %42 = arith.addf %38, %41 : vector<8x8xf32>
      %c8 = arith.constant 8 : index
      %c0_35 = arith.constant 0 : index
      %43 = vector.load %arg11[%c8, %c0_35] : memref<16x8xf32, #tpu.memory_space<vmem>>, vector<8x8xf32>
      tpu.vector_store %arg11[%c8, %c0_35], %42 {strides = array<i32>} : memref<16x8xf32, #tpu.memory_space<vmem>>, vector<8x8xf32>,
    } else {
    }
    %c8_i32_2 = arith.constant 8 : i32
    %5 = arith.addi %1, %c8_i32_2 : i32
    %c1_i32 = arith.constant 1 : i32
    %6 = arith.subi %5, %c1_i32 : i32
    %7 = arith.cmpi sle, %6, %0 : i32
    %c8_i32_3 = arith.constant 8 : i32
    %8 = arith.addi %0, %c8_i32_3 : i32
    %c1_i32_4 = arith.constant 1 : i32
    %9 = arith.subi %8, %c1_i32_4 : i32
    %10 = arith.cmpi sle, %1, %9 : i32
    %11 = arith.extui %7 : i1 to i32
    %c0_i32_5 = arith.constant 0 : i32
    %12 = arith.cmpi ne, %11, %c0_i32_5 : i32
    scf.if %12 {
      %c0 = arith.constant 0 : index
      %c0_9 = arith.constant 0 : index
      %20 = vector.load %arg11[%c0, %c0_9] : memref<16x8xf32, #tpu.memory_space<vmem>>, vector<16x8xf32>
      %c0_10 = arith.constant 0 : index
      %c0_11 = arith.constant 0 : index
      %c0_12 = arith.constant 0 : index
      %c0_13 = arith.constant 0 : index
      %21 = vector.load %arg5[%c0_10, %c0_11, %c0_12, %c0_13] : memref<1x1x8x8xf32, #tpu.memory_space<vmem>>, vector<1x1x8x8xf32>
      %22 = vector.shape_cast %21 : vector<1x1x8x8xf32> to vector<8x8xf32>
      %cst = arith.constant dense<0.000000e+00> : vector<16x8xf32>
      %23 = tpu.matmul %20, %22, %cst {dimension_numbers = #tpu.dot_dimension_numbers<[1], [1], [0], [0], [0, 0, 1, 0], [], []>} : vector<16x8xf32>, vector<8x8xf32>, vector<16x8xf32> -> vector<16x8xf32>
      %c0_14 = arith.constant 0 : index
      %c0_15 = arith.constant 0 : index
      %c0_16 = arith.constant 0 : index
      %c0_17 = arith.constant 0 : index
      %24 = vector.load %arg6[%c0_14, %c0_15, %c0_16, %c0_17] : memref<1x1x8x8xf32, #tpu.memory_space<vmem>>, vector<1x1x8x8xf32>
      %25 = vector.shape_cast %24 : vector<1x1x8x8xf32> to vector<8x8xf32>
      %c0_18 = arith.constant 0 : index
      %c0_19 = arith.constant 0 : index
      %26 = vector.load %arg12[%c0_18, %c0_19] : memref<16x1xf32, #tpu.memory_space<vmem>>, vector<16x1xf32>
      %cst_20 = arith.constant dense<0xFF800000> : vector<16xf32>
      %27 = vector.multi_reduction <maximumf>, %23, %cst_20 [1] : vector<16x8xf32> to vector<16xf32>
      %28 = vector.shape_cast %27 : vector<16xf32> to vector<16x1xf32>
      %29 = arith.maximumf %26, %28 : vector<16x1xf32>
      %30 = arith.subf %26, %29 : vector<16x1xf32>
      %31 = math.exp %30 : vector<16x1xf32>
      %32 = vector.broadcast %29 : vector<16x1xf32> to vector<16x8xf32>
      %33 = arith.subf %23, %32 : vector<16x8xf32>
      %34 = math.exp %33 : vector<16x8xf32>
      %c0_21 = arith.constant 0 : index
      %c0_22 = arith.constant 0 : index
      %35 = vector.load %arg13[%c0_21, %c0_22] : memref<16x1xf32, #tpu.memory_space<vmem>>, vector<16x1xf32>
      %36 = arith.mulf %31, %35 : vector<16x1xf32>
      %cst_23 = arith.constant dense<0.000000e+00> : vector<16xf32>
      %37 = vector.multi_reduction <add>, %34, %cst_23 [1] : vector<16x8xf32> to vector<16xf32>
      %38 = vector.shape_cast %37 : vector<16xf32> to vector<16x1xf32>
      %39 = arith.addf %36, %38 : vector<16x1xf32>
      %c0_24 = arith.constant 0 : index
      %c0_25 = arith.constant 0 : index
      %40 = vector.load %arg13[%c0_24, %c0_25] : memref<16x1xf32, #tpu.memory_space<vmem>>, vector<16x1xf32>
      tpu.vector_store %arg13[%c0_24, %c0_25], %39 {strides = array<i32>} : memref<16x1xf32, #tpu.memory_space<vmem>>, vector<16x1xf32>,
      %c0_26 = arith.constant 0 : index
      %c0_27 = arith.constant 0 : index
      %41 = vector.load %arg14[%c0_26, %c0_27] : memref<16x8xf32, #tpu.memory_space<vmem>>, vector<16x8xf32>
      %42 = vector.broadcast %31 : vector<16x1xf32> to vector<16x8xf32>
      %43 = arith.mulf %42, %41 : vector<16x8xf32>
      %cst_28 = arith.constant dense<0.000000e+00> : vector<16x8xf32>
      %44 = tpu.matmul %34, %25, %cst_28 {dimension_numbers = #tpu.dot_dimension_numbers<[1], [0], [0], [1], [0, 0, 1, 1], [], []>} : vector<16x8xf32>, vector<8x8xf32>, vector<16x8xf32> -> vector<16x8xf32>
      %45 = arith.addf %43, %44 : vector<16x8xf32>
      %c0_29 = arith.constant 0 : index
      %c0_30 = arith.constant 0 : index
      %46 = vector.load %arg14[%c0_29, %c0_30] : memref<16x8xf32, #tpu.memory_space<vmem>>, vector<16x8xf32>
      tpu.vector_store %arg14[%c0_29, %c0_30], %45 {strides = array<i32>} : memref<16x8xf32, #tpu.memory_space<vmem>>, vector<16x8xf32>,
      %c0_31 = arith.constant 0 : index
      %c0_32 = arith.constant 0 : index
      %47 = vector.load %arg12[%c0_31, %c0_32] : memref<16x1xf32, #tpu.memory_space<vmem>>, vector<16x1xf32>
      tpu.vector_store %arg12[%c0_31, %c0_32], %29 {strides = array<i32>} : memref<16x1xf32, #tpu.memory_space<vmem>>, vector<16x1xf32>,
    } else {
    }
    %true = arith.constant true
    %13 = arith.xori %7, %true : i1
    %14 = arith.andi %10, %13 : i1
    %15 = arith.extui %14 : i1 to i32
    %c0_i32_6 = arith.constant 0 : i32
    %16 = arith.cmpi ne, %15, %c0_i32_6 : i32
    scf.if %16 {
      %c0 = arith.constant 0 : index
      %c0_9 = arith.constant 0 : index
      %20 = vector.load %arg11[%c0, %c0_9] : memref<16x8xf32, #tpu.memory_space<vmem>>, vector<16x8xf32>
      %c0_10 = arith.constant 0 : index
      %c0_11 = arith.constant 0 : index
      %c0_12 = arith.constant 0 : index
      %c0_13 = arith.constant 0 : index
      %21 = vector.load %arg5[%c0_10, %c0_11, %c0_12, %c0_13] : memref<1x1x8x8xf32, #tpu.memory_space<vmem>>, vector<1x1x8x8xf32>
      %22 = vector.shape_cast %21 : vector<1x1x8x8xf32> to vector<8x8xf32>
      %cst = arith.constant dense<0.000000e+00> : vector<16x8xf32>
      %23 = tpu.matmul %20, %22, %cst {dimension_numbers = #tpu.dot_dimension_numbers<[1], [1], [0], [0], [0, 0, 1, 0], [], []>} : vector<16x8xf32>, vector<8x8xf32>, vector<16x8xf32> -> vector<16x8xf32>
      %24 = tpu.iota {dimensions = array<i32: 1>} : vector<2x8x8xi32>
      %25 = vector.shape_cast %24 : vector<2x8x8xi32> to vector<16x8xi32>
      %26 = vector.broadcast %0 : i32 to vector<16x8xi32>
      %27 = arith.addi %26, %25 : vector<16x8xi32>
      %28 = tpu.iota {dimensions = array<i32: 1>} : vector<16x8xi32>
      %29 = vector.broadcast %1 : i32 to vector<16x8xi32>
      %30 = arith.addi %29, %28 : vector<16x8xi32>
      %31 = arith.cmpi sle, %30, %27 : vector<16x8xi32>
      %cst_14 = arith.constant -1.000000e+30 : f32
      %32 = vector.broadcast %cst_14 : f32 to vector<16x8xf32>
      %33 = arith.select %31, %23, %32 : vector<16x8xi1>, vector<16x8xf32>
      %c0_15 = arith.constant 0 : index
      %c0_16 = arith.constant 0 : index
      %c0_17 = arith.constant 0 : index
      %c0_18 = arith.constant 0 : index
      %34 = vector.load %arg6[%c0_15, %c0_16, %c0_17, %c0_18] : memref<1x1x8x8xf32, #tpu.memory_space<vmem>>, vector<1x1x8x8xf32>
      %35 = vector.shape_cast %34 : vector<1x1x8x8xf32> to vector<8x8xf32>
      %c0_19 = arith.constant 0 : index
      %c0_20 = arith.constant 0 : index
      %36 = vector.load %arg12[%c0_19, %c0_20] : memref<16x1xf32, #tpu.memory_space<vmem>>, vector<16x1xf32>
      %cst_21 = arith.constant dense<0xFF800000> : vector<16xf32>
      %37 = vector.multi_reduction <maximumf>, %33, %cst_21 [1] : vector<16x8xf32> to vector<16xf32>
      %38 = vector.shape_cast %37 : vector<16xf32> to vector<16x1xf32>
      %39 = arith.maximumf %36, %38 : vector<16x1xf32>
      %40 = arith.subf %36, %39 : vector<16x1xf32>
      %41 = math.exp %40 : vector<16x1xf32>
      %42 = vector.broadcast %39 : vector<16x1xf32> to vector<16x8xf32>
      %43 = arith.subf %33, %42 : vector<16x8xf32>
      %44 = math.exp %43 : vector<16x8xf32>
      %c0_22 = arith.constant 0 : index
      %c0_23 = arith.constant 0 : index
      %45 = vector.load %arg13[%c0_22, %c0_23] : memref<16x1xf32, #tpu.memory_space<vmem>>, vector<16x1xf32>
      %46 = arith.mulf %41, %45 : vector<16x1xf32>
      %cst_24 = arith.constant dense<0.000000e+00> : vector<16xf32>
      %47 = vector.multi_reduction <add>, %44, %cst_24 [1] : vector<16x8xf32> to vector<16xf32>
      %48 = vector.shape_cast %47 : vector<16xf32> to vector<16x1xf32>
      %49 = arith.addf %46, %48 : vector<16x1xf32>
      %c0_25 = arith.constant 0 : index
      %c0_26 = arith.constant 0 : index
      %50 = vector.load %arg13[%c0_25, %c0_26] : memref<16x1xf32, #tpu.memory_space<vmem>>, vector<16x1xf32>
      tpu.vector_store %arg13[%c0_25, %c0_26], %49 {strides = array<i32>} : memref<16x1xf32, #tpu.memory_space<vmem>>, vector<16x1xf32>,
      %c0_27 = arith.constant 0 : index
      %c0_28 = arith.constant 0 : index
      %51 = vector.load %arg14[%c0_27, %c0_28] : memref<16x8xf32, #tpu.memory_space<vmem>>, vector<16x8xf32>
      %52 = vector.broadcast %41 : vector<16x1xf32> to vector<16x8xf32>
      %53 = arith.mulf %52, %51 : vector<16x8xf32>
      %cst_29 = arith.constant dense<0.000000e+00> : vector<16x8xf32>
      %54 = tpu.matmul %44, %35, %cst_29 {dimension_numbers = #tpu.dot_dimension_numbers<[1], [0], [0], [1], [0, 0, 1, 1], [], []>} : vector<16x8xf32>, vector<8x8xf32>, vector<16x8xf32> -> vector<16x8xf32>
      %55 = arith.addf %53, %54 : vector<16x8xf32>
      %c0_30 = arith.constant 0 : index
      %c0_31 = arith.constant 0 : index
      %56 = vector.load %arg14[%c0_30, %c0_31] : memref<16x8xf32, #tpu.memory_space<vmem>>, vector<16x8xf32>
      tpu.vector_store %arg14[%c0_30, %c0_31], %55 {strides = array<i32>} : memref<16x8xf32, #tpu.memory_space<vmem>>, vector<16x8xf32>,
      %c0_32 = arith.constant 0 : index
      %c0_33 = arith.constant 0 : index
      %57 = vector.load %arg12[%c0_32, %c0_33] : memref<16x1xf32, #tpu.memory_space<vmem>>, vector<16x1xf32>
      tpu.vector_store %arg12[%c0_32, %c0_33], %39 {strides = array<i32>} : memref<16x1xf32, #tpu.memory_space<vmem>>, vector<16x1xf32>,
    } else {
    }
    %c0_i32_7 = arith.constant 0 : i32
    %17 = arith.cmpi eq, %arg3, %c0_i32_7 : i32
    %18 = arith.extui %17 : i1 to i32
    %c0_i32_8 = arith.constant 0 : i32
    %19 = arith.cmpi ne, %18, %c0_i32_8 : i32
    scf.if %19 {
      %c0 = arith.constant 0 : index
      %c0_9 = arith.constant 0 : index
      %20 = vector.load %arg13[%c0, %c0_9] : memref<16x1xf32, #tpu.memory_space<vmem>>, vector<16x1xf32>
      %21 = tpu.reciprocal %20 {approx = true} : vector<16x1xf32> -> vector<16x1xf32>
      %c0_10 = arith.constant 0 : index
      %c0_11 = arith.constant 0 : index
      %22 = vector.load %arg14[%c0_10, %c0_11] : memref<16x8xf32, #tpu.memory_space<vmem>>, vector<16x8xf32>
      %23 = vector.broadcast %21 : vector<16x1xf32> to vector<16x8xf32>
      %24 = arith.mulf %22, %23 : vector<16x8xf32>
      %25 = vector.shape_cast %24 : vector<16x8xf32> to vector<2x8x8xf32>
      %c0_12 = arith.constant 0 : index
      %c0_13 = arith.constant 0 : index
      %c0_14 = arith.constant 0 : index
      %c0_15 = arith.constant 0 : index
      %26 = vector.load %arg10[%c0_12, %c0_13, %c0_14, %c0_15] : memref<1x2x8x8xf32, #tpu.memory_space<vmem>>, vector<1x2x8x8xf32>
      %27 = vector.shape_cast %26 : vector<1x2x8x8xf32> to vector<2x8x8xf32>
      %28 = vector.shape_cast %25 : vector<2x8x8xf32> to vector<1x2x8x8xf32>
      tpu.vector_store %arg10[%c0_12, %c0_13, %c0_14, %c0_15], %28 {strides = array<i32>} : memref<1x2x8x8xf32, #tpu.memory_space<vmem>>, vector<1x2x8x8xf32>,
    } else {
    }
    return
  }
  func.func @transform_0(%arg0: i32, %arg1: i32, %arg2: i32, %arg3: i32) -> (i32, i32, i32, i32) {
    %c0_i32 = arith.constant 0 : i32
    %c0_i32_0 = arith.constant 0 : i32
    return %arg0, %arg1, %arg2, %c0_i32 : i32, i32, i32, i32
  }
  func.func @transform_1(%arg0: i32, %arg1: i32, %arg2: i32, %arg3: i32) -> (i32, i32, i32, i32) {
    %0 = arith.minsi %arg3, %arg2 : i32
    %c0_i32 = arith.constant 0 : i32
    %c0_i32_0 = arith.constant 0 : i32
    return %arg0, %arg1, %0, %c0_i32 : i32, i32, i32, i32
  }
  func.func @transform_2(%arg0: i32, %arg1: i32, %arg2: i32, %arg3: i32) -> (i32, i32, i32, i32) {
    %0 = arith.minsi %arg3, %arg2 : i32
    %c0_i32 = arith.constant 0 : i32
    %c0_i32_0 = arith.constant 0 : i32
    return %arg0, %arg1, %0, %c0_i32 : i32, i32, i32, i32
  }
  func.func @transform_3(%arg0: i32, %arg1: i32, %arg2: i32, %arg3: i32) -> (i32, i32) {
    %c0_i32 = arith.constant 0 : i32
    %c0_i32_0 = arith.constant 0 : i32
    return %arg2, %c0_i32 : i32, i32
  }
  func.func @transform_4(%arg0: i32, %arg1: i32, %arg2: i32, %arg3: i32) -> (i32, i32) {
    %c0_i32 = arith.constant 0 : i32
    %c0_i32_0 = arith.constant 0 : i32
    return %arg2, %c0_i32 : i32, i32
  }
  func.func @transform_5(%arg0: i32, %arg1: i32, %arg2: i32, %arg3: i32) -> (i32, i32) {
    %c0_i32 = arith.constant 0 : i32
    %c0_i32_0 = arith.constant 0 : i32
    %c0_i32_1 = arith.constant 0 : i32
    return %c0_i32, %c0_i32_0 : i32, i32
  }
  func.func @transform_6(%arg0: i32, %arg1: i32, %arg2: i32, %arg3: i32) -> (i32, i32, i32, i32) {
    %c0_i32 = arith.constant 0 : i32
    %c0_i32_0 = arith.constant 0 : i32
    return %arg0, %arg1, %arg2, %c0_i32 : i32, i32, i32, i32
  }
}

module attributes {stable_mosaic.version = 11 : i64} {
  func.func @out_proj_residual_kernel(%arg0: i32, %arg1: i32, %arg2: memref<16x32xf32, #tpu.memory_space<vmem>>, %arg3: memref<32x32xf32, #tpu.memory_space<vmem>>, %arg4: memref<16x32xf32, #tpu.memory_space<vmem>>, %arg5: memref<16x32xf32, #tpu.memory_space<vmem>>) attributes {dimension_semantics = [#tpu.dimension_semantics<parallel>, #tpu.dimension_semantics<parallel>], iteration_bounds = array<i64: 1, 1>, scalar_prefetch = 0 : i64, scratch_operands = 0 : i64, tpu.core_type = #tpu.core_type<tc>, window_params = [{transform_indices = @transform_0, window_bounds = array<i64: 16, 32>}, {transform_indices = @transform_1, window_bounds = array<i64: 32, 32>}, {transform_indices = @transform_2, window_bounds = array<i64: 16, 32>}, {transform_indices = @transform_3, window_bounds = array<i64: 16, 32>}]} {
    %c0 = arith.constant 0 : index
    %c0_0 = arith.constant 0 : index
    %0 = vector.load %arg2[%c0, %c0_0] : memref<16x32xf32, #tpu.memory_space<vmem>>, vector<16x32xf32>
    %c0_1 = arith.constant 0 : index
    %c0_2 = arith.constant 0 : index
    %1 = vector.load %arg3[%c0_1, %c0_2] : memref<32x32xf32, #tpu.memory_space<vmem>>, vector<32x32xf32>
    %cst = arith.constant dense<0.000000e+00> : vector<16x32xf32>
    %2 = tpu.matmul %0, %1, %cst {dimension_numbers = #tpu.dot_dimension_numbers<[1], [0], [0], [1], [0, 0, 1, 1], [], []>} : vector<16x32xf32>, vector<32x32xf32>, vector<16x32xf32> -> vector<16x32xf32>
    %c0_3 = arith.constant 0 : index
    %c0_4 = arith.constant 0 : index
    %3 = vector.load %arg4[%c0_3, %c0_4] : memref<16x32xf32, #tpu.memory_space<vmem>>, vector<16x32xf32>
    %4 = arith.addf %3, %2 : vector<16x32xf32>
    %c0_5 = arith.constant 0 : index
    %c0_6 = arith.constant 0 : index
    %5 = vector.load %arg5[%c0_5, %c0_6] : memref<16x32xf32, #tpu.memory_space<vmem>>, vector<16x32xf32>
    tpu.vector_store %arg5[%c0_5, %c0_6], %4 {strides = array<i32>} : memref<16x32xf32, #tpu.memory_space<vmem>>, vector<16x32xf32>,
    return
  }
  func.func @transform_0(%arg0: i32, %arg1: i32) -> (i32, i32) {
    %c0_i32 = arith.constant 0 : i32
    %c0_i32_0 = arith.constant 0 : i32
    return %arg0, %c0_i32 : i32, i32
  }
  func.func @transform_1(%arg0: i32, %arg1: i32) -> (i32, i32) {
    %c0_i32 = arith.constant 0 : i32
    %c0_i32_0 = arith.constant 0 : i32
    return %c0_i32, %arg1 : i32, i32
  }
  func.func @transform_2(%arg0: i32, %arg1: i32) -> (i32, i32) {
    %c0_i32 = arith.constant 0 : i32
    return %arg0, %arg1 : i32, i32
  }
  func.func @transform_3(%arg0: i32, %arg1: i32) -> (i32, i32) {
    %c0_i32 = arith.constant 0 : i32
    return %arg0, %arg1 : i32, i32
  }
}

</mosaic_0001>

<bundles_post_ra>
// kernel: attention_block_forward.4
= control target key start
LH: loop header
LB: loop body
LE: loop exit
PB: predicated region body
PF: predicated region fallthrough
CT: control target
= control target key end

     0   :  { %8 = vsyncpa [#allocation4], 0  ;;  %s218_s12 = smov [#allocation3]   ;;  %s274_s0 = inlined_call_operand.vmem [shape: f32[16,32], index: 0, kind: input, shape index: {}]   ;;  %s275_s1 = inlined_call_operand.vmem [shape: f32[1,32], index: 1, kind: input, shape index: {}]   ;;  %s276_s2 = inlined_call_operand.hbm [shape: f32[32,64], index: 2, kind: input, shape index: {}]   ;;  %s277_s3 = inlined_call_operand.vmem [shape: f32[16,64], index: 3, kind: output, shape index: {}]  }
   0x1   :  { %s18_s13 = sshll.u32 %s218_s12, 4  ;;  %s194_s16 = scalar_lea.hbm %s276_s2, 512  ;;  %s19_s13 = int_to_ptr.vmem [resolvable:$true] %s18_s13 }
   0x2   :  { %p195_p0 = scmp.ne.s32.totalorder %s276_s2, %s194_s16  ;;  %p198_p1 = scmp.lt.u32.totalorder %s194_s16, %s276_s2 }
   0x4   :  { %p200_p2 = pnand %p198_p1, %p195_p0 }
   0x6   :  { %203 = shalt.err (!%p200_p2)
}
   0x7   :  { %s204_s21 = scalar_lea.vmem %s19_s13, 512  ;;  %p209_p4 = scmp.lt.s32.totalorder %s19_s13, %s19_s13 }
   0x8   :  { %p205_p3 = scmp.ne.s32.totalorder %s19_s13, %s204_s21  ;;  %p210_p5 = scmp.lt.s32.totalorder %s204_s21, %s204_s21 }
   0xa   :  { %p211_p6 = por %p210_p5, %p209_p4 }
   0xc   :  { %p212_p7 = pnand %p211_p6, %p205_p3 }
   0xe   :  { %215 = shalt.err (!%p212_p7)
}
   0xf   :  { %s219_s22 = smov 128   ;;  %s220_s23 = smov 8  }
  0x10   :  { %24 = dma.hbm_to_vmem [thread:$0]  %s276_s2, 512, %s19_s13, [#allocation4], %s219_s22, %s219_s22, %s220_s23  }
  0x11   :  { %216 = dma.done.wait [#allocation4], 512  }
  0x12   :  { %217 = vsyncadd [#allocation4], 4294966784  ;;  %v32_v0 = vld [vmem:[%s274_s0] sm:$0xff]  ;;  %vm36_vm0 = vcmask 261120   ;;  %v33_v1 = vld [vmem:[%s274_s0 + $0x8] sm:$0xff]  ;;  %vm151_vm1 = vcmask 523264  }
  0x13   :  { %v34_v2 = vmul.f32 %v32_v0, %v32_v0  ;;  %v35_v3 = vmul.f32 %v33_v1, %v33_v1  ;;  %v65_v6 = vld [vmem:[#allocation3] sm:$0xff]  ;;  %v66_v7 = vld [vmem:[#allocation3 + $0x8] sm:$0xff]  ;;  %v67_v9 = vld [vmem:[#allocation3 + $0x10] sm:$0xff] }
  0x14   :  { %v179_v8 = vpack.c.bf16 %v66_v7, %v65_v6  ;;  %v68_v10 = vld [vmem:[#allocation3 + $0x18] sm:$0xff]  ;;  %v159_v19 = vld [vmem:[%s275_s1] ss:$0 sm:$0xff] }
  0x15   :  { %v37_v4 = vsel %vm36_vm0, %v34_v2, 0.0  ;;  %v40_v5 = vsel %vm36_vm0, %v35_v3, 0.0  ;;  %v183_v11 = vpack.c.bf16 %v68_v10, %v67_v9 }
  0x16   :  { %38 = vadd.xlane.f32.xlu0 %v37_v4  ;;  %180 = vmatprep.subr.bf16.mxu0 %v179_v8 }
  0x17   :  { %182 = vmatpush3.bf16.msra.mxu0 %v179_v8 }
  0x18   :  { %184 = vmatprep.subr.bf16.mxu0 %v183_v11 }
  0x1a   :  { %41 = vadd.xlane.f32.xlu0 %v40_v5 }
  0x1b   :  { %186 = vmatpush3.bf16.msra.mxu0 %v183_v11 }
  0xa3   :  { %v39_v12 = vpop.xlane.xlu0 %38 }
  0xa4   :  { %v44_v13 = vmul.f32 0.03125, %v39_v12 }
  0xa6   :  { %v46_v14 = vadd.f32 1e-07, %v44_v13 }
  0xa7   :  { %v42_v15 = vpop.xlane.xlu0 %41 }
  0xa8   :  { %190 = vrsqrt.f32 %v46_v14  ;;  %v45_v16 = vmul.f32 0.03125, %v42_v15 }
  0xaa   :  { %v47_v17 = vadd.f32 1e-07, %v45_v16 }
  0xac   :  { %192 = vrsqrt.f32 %v47_v17 }
  0xb2   :  { %v191_v18 = vpop.eup %190 }
  0xb3   :  { %v50_v20 = vmul.f32 %v191_v18, %v32_v0 }
  0xb5   :  { %v59_v21 = vmul.f32 %v159_v19, %v50_v20 }
  0xb6   :  { %v193_v22 = vpop.eup %192 }
  0xb7   :  { %61 = vst.msk [vmem:[#allocation2] sm:$0xff] %vm36_vm0, %v59_v21  ;;  %v51_v23 = vmul.f32 %v193_v22, %v33_v1 }
  0xb9   :  { %v60_v24 = vmul.f32 %v159_v19, %v51_v23 }
  0xbb   :  { %62 = vst.msk [vmem:[#allocation2 + $0x8] sm:$0xff] %vm36_vm0, %v60_v24 }
  0xbe   :  { %v63_v25 = vld [vmem:[#allocation2] sm:$0xff] }
  0xbf   :  { %176 = vmatprep.mubr.msk.f32.mxu0 %vm36_vm0, %v63_v25 }
  0xc2   :  { %v64_v26 = vld [vmem:[#allocation2 + $0x8] sm:$0xff] }
  0xc3   :  { %177 = vmatmul.mubr.msk.f32.vlgmr.msra.gmra.mrb[0].mxu0 %vm36_vm0, %v64_v26 }
 0x196   :  { %v178_v27 = vpop.f32.mrb[0].mxu0 }
 0x197   :  { %153 = vst.msk [vmem:[%s277_s3 + $0x8] sm:$0xff] %vm151_vm1, %v178_v27  ;;  %v142_v28 = vpop.f32.mrb[1].mxu0 }
 0x198   :  { %152 = vst.msk [vmem:[%s277_s3] sm:$0xff] %vm151_vm1, %v142_v28 }
 0x199   :  { %158 = vsyncpa [#allocation4], 1 }

// kernel: attention_block_forward.5
= control target key start
LH: loop header
LB: loop body
LE: loop exit
PB: predicated region body
PF: predicated region fallthrough
CT: control target
= control target key end

     0   :  { %s634_s15 = smov 0   ;;  %s636_s16 = smov 0   ;;  %s694_s0 = inlined_call_operand.vmem [shape: f32[2,2,8,8], index: 0, kind: input, shape index: {}]   ;;  %s695_s1 = inlined_call_operand.vmem [shape: f32[8,8], index: 1, kind: input, shape index: {}]   ;;  %s696_s2 = inlined_call_operand.vmem [shape: f32[8,8], index: 2, kind: input, shape index: {}]   ;;  %s697_s3 = inlined_call_operand.vmem [shape: f32[8,8], index: 3, kind: input, shape index: {}]   ;;  %s698_s4 = inlined_call_operand.vmem [shape: f32[2,2,8,8], index: 4, kind: output, shape index: {}]  }
   0x1   :  { %s638_s17 = smov 0   ;;  %s640_s18 = smov 0  }
   0x2   :  { %s642_s19 = smov 0  }
   0x3 LB: > { %s29_s20 = sadd.s32 1, %s597_s17  ;;  %s33_s21 = sadd.s32 1, %s601_s18  ;;  %s605_s19 = sphi %s642_s19, %s14_s19   ;;  %s601_s18 = sphi %s640_s18, %s702_s18   ;;  %s597_s17 = sphi %s638_s17, %s701_s17   ;;  %s593_s16 = sphi %s636_s16, %s700_s16   ;;  %s589_s15 = sphi %s634_s15, %s699_s15  }
   0x4   : > { %p31_p0 = scmp.ge.s32.totalorder %s29_s20, 2  ;;  %p510_p1 = scmp.ge.s32.totalorder %s605_s19, 1 }
   0x5   : > { %p213_p2 = scmp.lt.s32.totalorder %s605_s19, 5 }
   0x6   : > { %s704_s20 = smov (%p31_p0, %s29_s20), 0  ;;  %s706_s21 = smov (!%p31_p0, %s33_s21), %s601_s18 }
   0x7   : > { %p214_p3 = pnand %p510_p1, %p213_p2  ;;  %p35_p4 = scmp.ge.s32.totalorder %s706_s21, 2 }
   0x8   : > { %v290_v0 = vld [vmem:[%s697_s3] sm:$0xff] (!%p214_p3)  ;;  %p259_p5 = scmp.lt.s32.totalorder (!%p214_p3), %s593_s16, 1  ;;  %p261_p6 = scmp.lt.s32.totalorder (!%p214_p3), %s589_s15, 1  ;;  %v607_v1 = vmov (!%p214_p3), 0.0   ;;  %vm608_vm0 = vmmov (!%p214_p3), 0   ;;  %vm291_vm1 = vcmask (!%p214_p3), 64512  }
   0x9   : > { %s708_s21 = smov (%p35_p4, %s706_s21), 0  ;;  %217 = sbr.rel (%p214_p3) target bundleno = 239 (0xef), region = 36 }
   0xa   : > { %520 = vmatprep.subr.mxu0 (!%p214_p3), %v607_v1  ;;  %522 = vmatprep.mubr.msk.f32.mxu0 (!%p214_p3), %vm608_vm0, %v607_v1  ;;  %v365_v3 = vld [vmem:[%s695_s1] sm:$0xff] (!%p214_p3) }
   0xb   : > { %521 = vmatpush3.msra.mxu0 (!%p214_p3), %v290_v0  ;;  %v367_v4 = vld [vmem:[%s696_s2] sm:$0xff] (!%p214_p3) }
  0x10   : > { %s710_s16 = smov (!%p259_p5, %s593_s16), 1  ;;  %s712_s15 = smov (!%p261_p6, %s589_s15), 1 }
  0x11   : > { %s511_s24 = sshll.u32 %s710_s16, 1 }
  0x12   : > { %s267_s25 = sadd.s32 %s511_s24, %s712_s15 }
  0x13   : > { %s512_s26 = sshll.u32 %s267_s25, 3 }
  0x14   : > { %s269_s29 = scalar_lea.vmem %s694_s0, %s512_s26  ;;  %s288_s10 = scalar_lea.vmem %s698_s4, %s512_s26 }
  0x15   : > { %v289_v2 = vld [vmem:[%s269_s29] sm:$0xff] }
  0x16   : > { %523 = vmatmul.mubr.msk.f32.vlgmr.msra.gmra.mrb[0].mxu0 %vm291_vm1, %v289_v2  ;;  %v366_v5 = vmul.f32 %v365_v3, %v289_v2 }
  0xe9   : > { %v361_v6 = vpop.f32.mrb[0].mxu0 }
  0xea   : > { %v368_v7 = vmul.f32 %v367_v4, %v361_v6  ;;  %v524_v8 = vpop.f32.mrb[1].mxu0 }
  0xec   : > { %v369_v9 = vadd.f32 %v368_v7, %v366_v5 }
  0xee   : > { %370 = vst.msk [vmem:[%s288_s10] sm:$0xff] %vm291_vm1, %v369_v9 }
  0xef PF: > { %s14_s19 = sadd.s32 1, %s605_s19   ;;  %s699_s15 = smov %s597_s17 }
  0xf0   : > { %p11_p7 = scmp.ge.s32.totalorder %s14_s19, 6   ;;  %s700_s16 = smov %s601_s18 }
  0xf1   : > { %s701_s17 = smov %s704_s20  ;;  %s702_s18 = smov %s708_s21 }
  0xf2   :  { %13 = sbr.rel (!%p11_p7) target bundleno = 3 (0x3), region = 72 }

// kernel: attention_block_forward.7
= control target key start
LH: loop header
LB: loop body
LE: loop exit
PB: predicated region body
PF: predicated region fallthrough
CT: control target
= control target key end

     0   :  { %vm21_vm0 = vcmask 261120   ;;  %s242_s0 = inlined_call_operand.vmem [shape: f32[16,32], index: 0, kind: input, shape index: {}]   ;;  %s243_s1 = inlined_call_operand.vmem [shape: f32[32,32], index: 1, kind: input, shape index: {}]   ;;  %s244_s2 = inlined_call_operand.vmem [shape: f32[16,32], index: 2, kind: input, shape index: {}]   ;;  %s245_s3 = inlined_call_operand.hbm [shape: f32[16,32], index: 3, kind: output, shape index: {}]  }
   0x1   :  { %v17_v0 = vld [vmem:[%s243_s1] sm:$0xff]  ;;  %v18_v1 = vld [vmem:[%s243_s1 + $0x8] sm:$0xff]  ;;  %v19_v2 = vld [vmem:[%s243_s1 + $0x10] sm:$0xff] }
   0x2   :  { %v144_v3 = vpack.c.bf16 %v18_v1, %v17_v0  ;;  %v20_v4 = vld [vmem:[%s243_s1 + $0x18] sm:$0xff]  ;;  %v15_v5 = vld [vmem:[%s242_s0] sm:$0xff] }
   0x3   :  { %v148_v6 = vpack.c.bf16 %v20_v4, %v19_v2  ;;  %141 = vmatprep.mubr.msk.f32.mxu0 %vm21_vm0, %v15_v5 }
   0x4   :  { %8 = vsyncpa [#allocation3], 0  ;;  %145 = vmatprep.subr.bf16.mxu0 %v144_v3  ;;  %v16_v7 = vld [vmem:[%s242_s0 + $0x8] sm:$0xff]  ;;  %s179_s25 = smov [#allocation2]   ;;  %v103_v9 = vld [vmem:[%s244_s2] sm:$0xff] }
   0x5   :  { %147 = vmatpush3.bf16.msra.mxu0 %v144_v3  ;;  %v104_v8 = vld [vmem:[%s244_s2 + $0x8] sm:$0xff]  ;;  %s114_s26 = sshll.u32 %s179_s25, 4  ;;  %s115_s26 = int_to_ptr.vmem [resolvable:$true] %s114_s26 }
   0x6   :  { %149 = vmatprep.subr.bf16.mxu0 %v148_v6  ;;  %s155_s0 = scalar_lea.vmem %s115_s26, 256  ;;  %p160_p1 = scmp.lt.s32.totalorder %s115_s26, %s115_s26 }
   0x7   :  { %p156_p0 = scmp.ne.s32.totalorder %s115_s26, %s155_s0  ;;  %p161_p2 = scmp.lt.s32.totalorder %s155_s0, %s155_s0 }
   0x9   :  { %151 = vmatpush3.bf16.msra.mxu0 %v148_v6  ;;  %p162_p3 = por %p161_p2, %p160_p1 }
   0xb   :  { %p163_p4 = pnand %p162_p3, %p156_p0 }
   0xc   :  { %142 = vmatmul.mubr.msk.f32.vlgmr.msra.gmra.mrb[0].mxu0 %vm21_vm0, %v16_v7 }
  0xdf   :  { %v143_v10 = vpop.f32.mrb[0].mxu0 }
  0xe0   :  { %v106_v11 = vadd.f32 %v143_v10, %v104_v8  ;;  %v94_v12 = vpop.f32.mrb[1].mxu0 }
  0xe1   :  { %v105_v13 = vadd.f32 %v103_v9, %v94_v12 }
  0xe2   :  { %108 = vst.msk [vmem:[#allocation2 + $0x8] sm:$0xff] %vm21_vm0, %v106_v11 }
  0xe3   :  { %107 = vst.msk [vmem:[#allocation2] sm:$0xff] %vm21_vm0, %v105_v13 }
  0xe4   :  { %166 = shalt.err (!%p163_p4)
}
  0xe5   :  { %s167_s2 = scalar_lea.hbm %s245_s3, 256 }
  0xe6   :  { %p168_p5 = scmp.ne.s32.totalorder %s245_s3, %s167_s2  ;;  %p171_p6 = scmp.lt.u32.totalorder %s167_s2, %s245_s3 }
  0xe8   :  { %p173_p7 = pnand %p171_p6, %p168_p5 }
  0xea   :  { %176 = shalt.err (!%p173_p7)
}
  0xeb   :  { %s180_s8 = smov 128   ;;  %s181_s9 = smov 8  }
  0xec   :  { %120 = dma.vmem_to_hbm [thread:$0]  %s115_s26, 256, %s245_s3, [#allocation3], %s180_s8, %s180_s8, %s181_s9  }
  0xed   :  { %177 = dma.done.wait [#allocation3], 256  }
  0xee   :  { %178 = vsyncadd [#allocation3], 4294967040 }
  0xef   :  { %124 = vsyncpa [#allocation3], 1 }

// kernel: attention_block_forward.6
= control target key start
LH: loop header
LB: loop body
LE: loop exit
PB: predicated region body
PF: predicated region fallthrough
CT: control target
= control target key end

     0   :  { %s1546_s21 = smov 0   ;;  %s1548_s22 = smov 0   ;;  %s1659_s0 = inlined_call_operand.vmem [shape: f32[2,4,8,8], index: 0, kind: input, shape index: {}]   ;;  %s1660_s1 = inlined_call_operand.vmem [shape: f32[2,2,8,8], index: 1, kind: input, shape index: {}]   ;;  %s1661_s2 = inlined_call_operand.vmem [shape: f32[2,2,8,8], index: 2, kind: input, shape index: {}]   ;;  %s1662_s3 = inlined_call_operand.vmem [shape: f32[8,8], index: 3, kind: input, shape index: {}]   ;;  %s1663_s4 = inlined_call_operand.vmem [shape: f32[8,8], index: 4, kind: input, shape index: {}]   ;;  %s1664_s5 = inlined_call_operand.vmem [shape: f32[8,8], index: 5, kind: input, shape index: {}]   ;;  %s1665_s6 = inlined_call_operand.vmem [shape: f32[2,4,8,8], index: 6, kind: output, shape index: {}]  }
   0x1   :  { %s1550_s23 = smov 0   ;;  %s1552_s24 = smov 0  }
   0x2   :  { %s1554_s25 = smov 0  }
   0x3 LB: > { %s38_s26 = sadd.s32 1, %s1497_s23  ;;  %s42_s27 = sadd.s32 1, %s1501_s24  ;;  %s1505_s25 = sphi %s1554_s25, %s16_s25   ;;  %s1501_s24 = sphi %s1552_s24, %s1669_s24   ;;  %s1497_s23 = sphi %s1550_s23, %s1668_s23   ;;  %s1493_s22 = sphi %s1548_s22, %s1667_s22   ;;  %s1489_s21 = sphi %s1546_s21, %s1666_s21  }
   0x4   : > { %p40_p0 = scmp.ge.s32.totalorder %s38_s26, 2  ;;  %p1353_p1 = scmp.ge.s32.totalorder %s1505_s25, 1 }
   0x5   : > { %p328_p2 = scmp.lt.s32.totalorder %s1505_s25, 5 }
   0x6   : > { %s1671_s26 = smov (%p40_p0, %s38_s26), 0  ;;  %s1673_s27 = smov (!%p40_p0, %s42_s27), %s1501_s24 }
   0x7   : > { %p329_p3 = pnand %p1353_p1, %p328_p2  ;;  %p44_p4 = scmp.ge.s32.totalorder %s1673_s27, 2 }
   0x8   : > { %vm481_vm0 = vcmask (!%p329_p3), 64512   ;;  %v488_v0 = vld [vmem:[%s1664_s5] sm:$0xff] (!%p329_p3)  ;;  %s1354_s30 = sshll.u32 (!%p329_p3), %s1489_s21, 1  ;;  %p407_p5 = scmp.lt.s32.totalorder (!%p329_p3), %s1493_s22, 1  ;;  %v1507_v1 = vmov (!%p329_p3), 0.0   ;;  %vm1508_vm1 = vmmov (!%p329_p3), 0   ;;  %v982_v20 = vlaneseq (!%p329_p3) }
   0x9   : > { %s1675_s27 = smov (%p44_p4, %s1673_s27), 0  ;;  %332 = sbr.rel (%p329_p3) target bundleno = 1048 (0x418), region = 44 }
   0xa   : > { %482 = vst.msk [vmem:[#allocation5] sm:$0xff] (!%p329_p3), %vm481_vm0, %v1507_v1  ;;  %483 = vst.msk [vmem:[#allocation5 + $0x8] sm:$0xff] (!%p329_p3), %vm481_vm0, %v1507_v1  ;;  %1389 = vmatprep.subr.mxu0 (!%p329_p3), %v1507_v1  ;;  %1394 = vmatprep.subr.mxu1 (!%p329_p3), %v1507_v1  ;;  %p409_p6 = scmp.lt.s32.totalorder (!%p329_p3), %s1354_s30, 3  ;;  %p423_p7 = scmp.lt.s32.totalorder (!%p329_p3), %s1489_s21, 1  ;;  %v484_v5 = vld [vmem:[%s1662_s3] sm:$0xff] (!%p329_p3)  ;;  %vm476_vm2 = vcmask (!%p329_p3), 7168  }
   0xb   : > { %1390 = vmatpush3.msra.mxu0 (!%p329_p3), %v488_v0  ;;  %1391 = vmatprep.mubr.msk.f32.mxu0 (!%p329_p3), %vm1508_vm1, %v1507_v1  ;;  %v485_v6 = vld [vmem:[%s1663_s4] sm:$0xff] (!%p329_p3)  ;;  %v1509_v19 = vmov (!%p329_p3), -1e+30   ;;  %479 = vst.msk [vmem:[#allocation4] sm:$0xff] (!%p329_p3), %vm476_vm2, %v1507_v1  ;;  %480 = vst.msk [vmem:[#allocation4 + $0x8] sm:$0xff] (!%p329_p3), %vm476_vm2, %v1507_v1  ;;  %v983_v21 = vshrl.u32 (!%p329_p3), %v982_v20, 7 }
   0xc   : > { %1395 = vmatpush3.msra.mxu1 (!%p329_p3), %v488_v0  ;;  %1396 = vmatprep.mubr.msk.f32.mxu1 (!%p329_p3), %vm1508_vm1, %v1507_v1  ;;  %477 = vst.msk [vmem:[#allocation3] sm:$0xff] (!%p329_p3), %vm476_vm2, %v1509_v19  ;;  %478 = vst.msk [vmem:[#allocation3 + $0x8] sm:$0xff] (!%p329_p3), %vm476_vm2, %v1509_v19  ;;  %v987_v22 = vand.u32 (!%p329_p3), 127, %v982_v20  ;;  %v1510_v29 = vmov (!%p329_p3), 0  }
   0xd   : > { %1453 = vset.pattern.permute.xlu1 (!%p329_p3), %v1510_v29  ;;  %1454 = vset.pattern.permute.xlu0 (!%p329_p3), %v1510_v29 }
   0xe   : > { %vm990_vm3 = vcmp.le.s32.totalorder (!%p329_p3), %v987_v22, %v983_v21 }
  0x10   : > { %s1677_s22 = smov (!%p407_p5, %s1493_s22), 1  ;;  %s1679_s30 = smov (!%p409_p6, %s1354_s30), 3 }
  0x11   : > { %s1355_s7 = sshll.u32 %s1677_s22, 2  ;;  %s1681_s21 = smov (!%p423_p7, %s1489_s21), 1  ;;  %v1042_v1 = vld [vmem:[#allocation5 + $0x8] sm:$0xff] }
  0x12   : > { %s1584_s8 = sadd.s32 %s1355_s7, %s1679_s30  ;;  %s1357_s13 = sshll.u32 %s1677_s22, 1  ;;  %v1026_v53 = vld [vmem:[#allocation4] sm:$0xff]  ;;  %v1027_v56 = vld [vmem:[#allocation4 + $0x8] sm:$0xff] }
  0x13   : > { %s1356_s9 = sshll.u32 %s1584_s8, 3  ;;  %s1596_s14 = sadd.s32 %s1357_s13, %s1681_s21  ;;  %v994_v30 = vld [vmem:[#allocation3] sm:$0xff]  ;;  %v995_v33 = vld [vmem:[#allocation3 + $0x8] sm:$0xff] }
  0x14   : > { %s417_s12 = scalar_lea.vmem %s1659_s0, %s1356_s9  ;;  %s1358_s15 = sshll.u32 %s1596_s14, 3 }
  0x15   : > { %v486_v2 = vld [vmem:[%s417_s12] sm:$0xff]  ;;  %v1365_v3 = vld [vmem:[%s417_s12 + $0x8] sm:$0xff]  ;;  %s431_s18 = scalar_lea.vmem %s1660_s1, %s1358_s15  ;;  %s446_s30 = scalar_lea.vmem %s1661_s2, %s1358_s15 }
  0x16   : > { %1392 = vmatmul.mubr.msk.f32.vlgmr.msra.gmra.mrb[0].mxu0 %vm481_vm0, %v486_v2  ;;  %1397 = vmatmul.mubr.msk.f32.vlgmr.msra.gmra.mrb[0].mxu1 %vm481_vm0, %v1365_v3  ;;  %v896_v4 = vld [vmem:[%s431_s18] sm:$0xff]  ;;  %v487_v7 = vmul.f32 %v486_v2, %v484_v5  ;;  %v567_v8 = vmul.f32 %v1365_v3, %v484_v5  ;;  %v1041_v3 = vld [vmem:[#allocation5] sm:$0xff]  ;;  %s468_s11 = scalar_lea.vmem %s1665_s6, %s1356_s9 }
  0x17   : > { %1399 = vmatprep.subr.msk.mxu0 %vm481_vm0, %v896_v4  ;;  %v993_v38 = vld [vmem:[%s446_s30] sm:$0xff] }
  0x18   : > { %1400 = vmatpush3.xpose.msk.msra.mxu0 %vm481_vm0, %v896_v4  ;;  %1404 = vmatprep.subr.mxu1 %v993_v38 }
  0x19   : > { %1405 = vmatpush3.msra.mxu1 %v993_v38 }
  0xe9   : > { %v558_v9 = vpop.f32.mrb[0].mxu0  ;;  %v638_v10 = vpop.f32.mrb[0].mxu1 }
  0xea   : > { %v562_v11 = vmul.f32 %v558_v9, %v485_v6  ;;  %v642_v12 = vmul.f32 %v638_v10, %v485_v6  ;;  %v1393_v13 = vpop.f32.mrb[1].mxu0  ;;  %v1398_v14 = vpop.f32.mrb[1].mxu1 }
  0xec   : > { %v563_v15 = vadd.f32 %v562_v11, %v487_v7  ;;  %v643_v16 = vadd.f32 %v642_v12, %v567_v8 }
  0xee   : > { %564 = vst.msk [vmem:[#allocation2] sm:$0xff] %vm481_vm0, %v563_v15  ;;  %644 = vst.msk [vmem:[#allocation2 + $0x8] sm:$0xff] %vm481_vm0, %v643_v16 }
  0xf5   : > { %v894_v17 = vld [vmem:[#allocation2] sm:$0xff]  ;;  %v895_v18 = vld [vmem:[#allocation2 + $0x8] sm:$0xff] }
  0xf6   : > { %1401 = vmatprep.mubr.msk.f32.mxu0 %vm481_vm0, %v894_v17 }
  0xf7   : > { %1402 = vmatmul.mubr.msk.f32.vlgmr.msra.gmra.mrb[2].mxu0 %vm481_vm0, %v895_v18 }
 0x1ca   : > { %v1403_v23 = vpop.f32.mrb[2].mxu0 }
 0x1cb   : > { %v973_v24 = vpop.f32.mrb[3].mxu0  ;;  %v992_v27 = vsel %vm990_vm3, %v1403_v23, -1e+30 }
 0x1cc   : > { %v991_v25 = vsel %vm990_vm3, %v973_v24, -1e+30  ;;  %v999_v28 = vsel %vm481_vm0, %v992_v27, -inf }
 0x1cd   : > { %v996_v26 = vsel %vm481_vm0, %v991_v25, -inf }
 0x1ce   : > { %997 = vmax.xlane.f32.xlu0 %v996_v26 }
 0x1d2   : > { %1000 = vmax.xlane.f32.xlu0 %v999_v28 }
 0x25b   : > { %v998_v31 = vpop.xlane.xlu0 %997 }
 0x25c   : > { %v1002_v32 = vmax.f32 %v994_v30, %v998_v31 }
 0x25e   : > { %v1004_v34 = vsub.f32 %v994_v30, %v1002_v32  ;;  %1140 = vst.msk [vmem:[#allocation3] sm:$0xff] %vm476_vm2, %v1002_v32  ;;  %1012 = vperm.xlu1 %1453, %v1002_v32  }
 0x25f   : > { %v1001_v35 = vpop.xlane.xlu0 %1000 }
 0x260   : > { %v1003_v36 = vmax.f32 %v995_v33, %v1001_v35  ;;  %v1006_v50 = vmul.f32 1.442695, %v1004_v34 }
 0x262   : > { %v1005_v37 = vsub.f32 %v995_v33, %v1003_v36  ;;  %1141 = vst.msk [vmem:[#allocation3 + $0x8] sm:$0xff] %vm476_vm2, %v1003_v36  ;;  %1017 = vperm.xlu1 %1453, %v1003_v36  }
 0x264   : > { %v1008_v49 = vmul.f32 1.442695, %v1005_v37 }
 0x2dd   : > { %v1013_v39 = vpop.permute.xlu1 %1012 }
 0x2de   : > { %v1020_v40 = vsub.f32 %v991_v25, %v1013_v39 }
 0x2e0   : > { %v1022_v41 = vmul.f32 1.442695, %v1020_v40 }
 0x2e1   : > { %v1018_v42 = vpop.permute.xlu1 %1017 }
 0x2e2   : > { %1455 = vpow2.f32 %v1022_v41  ;;  %v1021_v43 = vsub.f32 %v992_v27, %v1018_v42 }
 0x2e4   : > { %v1024_v44 = vmul.f32 1.442695, %v1021_v43 }
 0x2e6   : > { %1457 = vpow2.f32 %v1024_v44 }
 0x2e7   : > { %1459 = vpow2.f32 %v1008_v49 }
 0x2e8   : > { %1461 = vpow2.f32 %v1006_v50 }
 0x2ec   : > { %v1456_v45 = vpop.eup %1455 }
 0x2ed   : > { %1406 = vmatprep.mubr.msk.f32.mxu1 %vm481_vm0, %v1456_v45  ;;  %v1030_v46 = vsel %vm481_vm0, %v1456_v45, 0.0 }
 0x2ee   : > { %1031 = vadd.xlane.f32.xlu0 %v1030_v46 }
 0x2f0   : > { %v1458_v47 = vpop.eup %1457 }
 0x2f1   : > { %1407 = vmatmul.mubr.msk.f32.vlgmr.msra.gmra.mrb[2].mxu1 %vm481_vm0, %v1458_v47  ;;  %v1033_v48 = vsel %vm481_vm0, %v1458_v47, 0.0  ;;  %v1460_v51 = vpop.eup %1459 }
 0x2f2   : > { %1034 = vadd.xlane.f32.xlu1 %v1033_v48  ;;  %v1462_v52 = vpop.eup %1461  ;;  %v1029_v58 = vmul.f32 %v1460_v51, %v1027_v56 }
 0x2f3   : > { %v1028_v54 = vmul.f32 %v1462_v52, %v1026_v53 }
 0x303   : > { %1050 = vperm.xlu1 %1453, %v1460_v51  }
 0x304   : > { %1045 = vperm.xlu0 %1454, %v1462_v52  }
 0x37b   : > { %v1032_v55 = vpop.xlane.xlu0 %1031 }
 0x37c   : > { %v1036_v57 = vadd.f32 %v1032_v55, %v1028_v54 }
 0x37e   : > { %1039 = vst.msk [vmem:[#allocation4] sm:$0xff] %vm476_vm2, %v1036_v57 }
 0x37f   : > { %v1035_v59 = vpop.xlane.xlu1 %1034 }
 0x380   : > { %v1037_v60 = vadd.f32 %v1035_v59, %v1029_v58 }
 0x382   : > { %1040 = vst.msk [vmem:[#allocation4 + $0x8] sm:$0xff] %vm476_vm2, %v1037_v60 }
 0x383   : > { %v1051_v2 = vpop.permute.xlu1 %1050  ;;  %v1046_v4 = vpop.permute.xlu0 %1045 }
 0x384   : > { %v1054_v5 = vmul.f32 %v1051_v2, %v1042_v1  ;;  %v1053_v6 = vmul.f32 %v1046_v4, %v1041_v3 }
 0x385   : > { %v1145_v61 = vld [vmem:[#allocation4] sm:$0xff] }
 0x386   : > { %1463 = vrcp.f32 %v1145_v61 }
 0x389   : > { %v1146_v62 = vld [vmem:[#allocation4 + $0x8] sm:$0xff] }
 0x38a   : > { %1465 = vrcp.f32 %v1146_v62 }
 0x390   : > { %v1464_v63 = vpop.eup %1463 }
 0x391   : > { %1153 = vperm.xlu0 %1454, %v1464_v63  }
 0x394   : > { %v1466_v0 = vpop.eup %1465 }
 0x395   : > { %1158 = vperm.xlu0 %1454, %v1466_v0  }
 0x3c4   : > { %v1408_v7 = vpop.f32.mrb[2].mxu1 }
 0x3c5   : > { %v1137_v8 = vadd.f32 %v1408_v7, %v1054_v5  ;;  %v1127_v9 = vpop.f32.mrb[3].mxu1 }
 0x3c6   : > { %v1136_v10 = vadd.f32 %v1127_v9, %v1053_v6 }
 0x3c7   : > { %1139 = vst.msk [vmem:[#allocation5 + $0x8] sm:$0xff] %vm481_vm0, %v1137_v8 }
 0x3c8   : > { %1138 = vst.msk [vmem:[#allocation5] sm:$0xff] %vm481_vm0, %v1136_v10 }
 0x3ce   : > { %v1150_v14 = vld [vmem:[#allocation5 + $0x8] sm:$0xff] }
 0x3cf   : > { %v1149_v11 = vld [vmem:[#allocation5] sm:$0xff] }
 0x410   : > { %v1154_v12 = vpop.permute.xlu0 %1153 }
 0x411   : > { %v1161_v13 = vmul.f32 %v1154_v12, %v1149_v11 }
 0x413   : > { %1164 = vst.msk [vmem:[%s468_s11] sm:$0xff] %vm481_vm0, %v1161_v13 }
 0x414   : > { %v1159_v15 = vpop.permute.xlu0 %1158 }
 0x415   : > { %v1162_v16 = vmul.f32 %v1159_v15, %v1150_v14 }
 0x417   : > { %1165 = vst.msk [vmem:[%s468_s11 + $0x8] sm:$0xff] %vm481_vm0, %v1162_v16 }
 0x418 PF: > { %s16_s25 = sadd.s32 1, %s1505_s25   ;;  %s1666_s21 = smov %s1497_s23 }
 0x419   : > { %p13_p8 = scmp.ge.s32.totalorder %s16_s25, 6   ;;  %s1667_s22 = smov %s1501_s24 }
 0x41a   : > { %s1668_s23 = smov %s1671_s26  ;;  %s1669_s24 = smov %s1675_s27 }
 0x41b   :  { %15 = sbr.rel (!%p13_p8) target bundleno = 3 (0x3), region = 103 }

</bundles_post_ra>
